<compile_context>
chip_gen: v7x
topology: tpu7x:2x2x1
jax: 0.10.0
libtpu: 0.0.40
codegen_flags: <defaults>
</compile_context>

<pallas_src>
import functools

import jax
import jax.numpy as jnp
from jax.experimental import pallas as pl
from jax.experimental.pallas import tpu as pltpu


# ----------------------------------------------------------------------------
# helpers
# ----------------------------------------------------------------------------
def _cdiv(a, b):
    return (a + b - 1) // b


def _round_up(x, m):
    return ((x + m - 1) // m) * m


def _vmem_capacity_bytes():
    """Physical VMEM per TensorCore (generation-aware, with safe fallbacks)."""
    try:
        cap = int(pltpu.get_tpu_info().vmem_capacity_bytes)
        if cap > 0:
            return cap
    except Exception:
        pass
    try:
        kind = jax.devices()[0].device_kind.lower()
        return (64 if "v7" in kind else 128) * 1024 * 1024
    except Exception:
        return 64 * 1024 * 1024          # conservative default


def _num_tensorcores():
    """2 TensorCores per chip on v7x, 1 on v5e/v6e."""
    try:
        kind = jax.devices()[0].device_kind.lower()
        return 2 if "v7" in kind else 1
    except Exception:
        return 1


def _pick_row_tile(n_rows, n_cols, itemsize, num_partials, vmem_cap,
                   temps_bytes_per_elem, max_tile):
    """Largest row tile keeping the double-buffered (row_tile, C) input block
    plus live f32 intermediates within ~1/4 of physical VMEM (headroom for the
    rest of the pipeline and compiler scratch). Accounts for 128-lane physical
    padding of the last dim."""
    budget = max(vmem_cap // 4, 4 * 1024 * 1024)
    c_phys = _round_up(max(int(n_cols), 1), 128)
    per_row = c_phys * (2 * max(int(itemsize), 1) + int(temps_bytes_per_elem))
    tile = budget // max(per_row, 1)
    tile = max(8, min(int(max_tile), (tile // 8) * 8))
    needed = _round_up(_cdiv(n_rows, num_partials), 8)
    return max(8, min(tile, needed))


# ----------------------------------------------------------------------------
# Cross-entropy (nn.CrossEntropyLoss for smoothing=0.0)
# ----------------------------------------------------------------------------
def _ce_kernel(x_ref, t_ref, o_ref, acc_ref, *, smoothing, num_classes,
               total_rows, row_tile, mask_rows):
    p = pl.program_id(0)          # partial (core) axis -- "parallel"
    t = pl.program_id(1)          # row-tile axis       -- "arbitrary"

    @pl.when(t == 0)
    def _():
        acc_ref[...] = jnp.zeros_like(acc_ref)

    x = x_ref[...].astype(jnp.float32)                      # (TN, C)
    tgt = t_ref[...]                                        # (TN, 1) int32

    col = jax.lax.broadcasted_iota(jnp.int32, x.shape, 1)   # (TN, C)

    # Mask padded lanes when C is not a multiple of 128 (finite sentinel so
    # exp() underflows to 0 and no inf/NaN arithmetic is produced).
    lane_valid = None
    if num_classes % 128 != 0:
        lane_valid = col < num_classes
        x = jnp.where(lane_valid, x, jnp.float32(-1e30))

    # log-softmax pieces (full logprobs tensor never materialized)
    m = jnp.max(x, axis=-1, keepdims=True)                  # (TN, 1)
    shifted = x - m
    lse = jnp.log(jnp.sum(jnp.exp(shifted), axis=-1, keepdims=True))  # (TN, 1)

    # loss_row = lse - sum(w * shifted),  w = (1-s)*onehot(target) + s/C
    if smoothing == 0.0:
        contrib = jnp.where(col == tgt, shifted, jnp.float32(0.0))
    else:
        uniform = smoothing / num_classes
        w = jnp.where(col == tgt, jnp.float32(1.0 - smoothing + uniform),
                      jnp.float32(uniform))
        if lane_valid is not None:
            w = jnp.where(lane_valid, w, jnp.float32(0.0))
        contrib = w * shifted
    weighted = jnp.sum(contrib, axis=-1, keepdims=True)     # (TN, 1)

    loss = lse - weighted                                   # (TN, 1)

    # Zero contributions from rows past N (partial boundary block) and from
    # duplicated tiles created by the clamped index_map.
    if mask_rows:
        tile_idx = p * pl.num_programs(1) + t
        rows = tile_idx * row_tile + jax.lax.broadcasted_iota(
            jnp.int32, loss.shape, 0)
        loss = jnp.where(rows < total_rows, loss, jnp.float32(0.0))

    acc_ref[...] += jnp.sum(loss, axis=(0, 1), keepdims=True)   # (1, 1)

    @pl.when(t == pl.num_programs(1) - 1)
    def _():
        o_ref[0] = acc_ref[...]     # write this partial's sum once, at the end


def cross_entropy_loss(x, target, smoothing=0.0, *, row_tile=None,
                       num_partials=None):
    """x: (N, C) logits (f32 or bf16); target: (N,) int class ids -> f32 scalar.

    smoothing=0.0 matches nn.CrossEntropyLoss (BaseMethod.criterion_ce).
    """
    N, C = x.shape
    t2d = target.astype(jnp.int32).reshape(N, 1)

    vmem_cap = _vmem_capacity_bytes()
    if num_partials is None:
        num_partials = _num_tensorcores()
    P = max(1, min(int(num_partials), _cdiv(N, 8)))

    if row_tile is None:
        row_tile = _pick_row_tile(N, C, jnp.dtype(x.dtype).itemsize, P,
                                  vmem_cap, temps_bytes_per_elem=28,
                                  max_tile=2048)
    row_tile = max(8, (int(row_tile) // 8) * 8)

    total_tiles = _cdiv(N, row_tile)
    P = max(1, min(P, total_tiles))
    tiles_per_partial = _cdiv(total_tiles, P)
    mask_rows = (P * tiles_per_partial * row_tile != N)
    last_tile = total_tiles - 1

    # Clamp to the last valid block so no DMA starts past the array end; the
    # duplicated work this creates is zeroed by the in-kernel row mask.
    def row_map(p, t):
        return (jnp.minimum(p * tiles_per_partial + t, last_tile), 0)

    kernel = functools.partial(
        _ce_kernel,
        smoothing=float(smoothing),
        num_classes=C,
        total_rows=N,
        row_tile=row_tile,
        mask_rows=mask_rows,
    )

    out = pl.pallas_call(
        kernel,
        out_shape=jax.ShapeDtypeStruct((P, 1, 1), jnp.float32),
        grid_spec=pltpu.PrefetchScalarGridSpec(
            num_scalar_prefetch=0,
            grid=(P, tiles_per_partial),
            in_specs=[
                pl.BlockSpec((row_tile, C), row_map),
                pl.BlockSpec((row_tile, 1), row_map),
            ],
            out_specs=pl.BlockSpec((1, 1, 1), lambda p, t: (p, 0, 0)),
            scratch_shapes=[pltpu.VMEM((1, 1), jnp.float32)],
        ),
        compiler_params=pltpu.CompilerParams(
            dimension_semantics=("parallel", "arbitrary"),
            vmem_limit_bytes=int(vmem_cap * 3 // 4),
        ),
    )(x, t2d)

    # Combine per-core partial sums and scale once.
    return jnp.sum(out[:, 0, 0]) / jnp.float32(N)


# ----------------------------------------------------------------------------
# make_feature_vector: global average pool (B, C, H, W) -> (B, C)
# ----------------------------------------------------------------------------
def _gap_kernel(x_ref, o_ref, *, hw):
    x = x_ref[...].astype(jnp.float32)                      # (T, HW)
    if hw % 128 != 0:
        col = jax.lax.broadcasted_iota(jnp.int32, x.shape, 1)
        x = jnp.where(col < hw, x, jnp.float32(0.0))
    mean = jnp.sum(x, axis=-1, keepdims=True) * jnp.float32(1.0 / hw)
    o_ref[...] = mean.astype(o_ref.dtype)


def make_feature_vector(x, *, row_tile=None):
    """Pallas equivalent of F.adaptive_avg_pool2d(x, (1,1)) + flatten."""
    B, C, H, W = x.shape
    rows, hw = B * C, H * W
    xf = x.reshape(rows, hw)          # contiguous reshape: no HBM copy

    vmem_cap = _vmem_capacity_bytes()
    if row_tile is None:
        row_tile = _pick_row_tile(rows, hw, jnp.dtype(x.dtype).itemsize, 1,
                                  vmem_cap, temps_bytes_per_elem=12,
                                  max_tile=8192)
    tile = max(8, (int(row_tile) // 8) * 8)
    num_tiles = _cdiv(rows, tile)     # partial last block; OOB writes dropped

    out = pl.pallas_call(
        functools.partial(_gap_kernel, hw=hw),
        out_shape=jax.ShapeDtypeStruct((rows, 1), x.dtype),
        grid_spec=pltpu.PrefetchScalarGridSpec(
            num_scalar_prefetch=0,
            grid=(num_tiles,),
            in_specs=[pl.BlockSpec((tile, hw), lambda i: (i, 0))],
            out_specs=pl.BlockSpec((tile, 1), lambda i: (i, 0)),
        ),
        compiler_params=pltpu.CompilerParams(
            dimension_semantics=("parallel",),
            vmem_limit_bytes=int(vmem_cap * 3 // 4),
        ),
    )(xf)
    return out[:, 0].reshape(B, C)


# ----------------------------------------------------------------------------
# references + demo
# ----------------------------------------------------------------------------
def _reference_ce(x, target, smoothing=0.0):
    logprobs = jax.nn.log_softmax(x.astype(jnp.float32), axis=-1)
    nll = -jnp.take_along_axis(logprobs, target[:, None].astype(jnp.int32),
                               axis=-1)[:, 0]
    smooth = -jnp.mean(logprobs, axis=-1)
    return jnp.mean((1.0 - smoothing) * nll + smoothing * smooth)


if __name__ == "__main__":
    key = jax.random.PRNGKey(0)
    k1, k2, k3, k4, k5, k6, k7 = jax.random.split(key, 7)

    # --- criterion_ce (nn.CrossEntropyLoss), aligned shapes -----------------
    N, Cc = 16, 128
    logits = jax.random.normal(k1, (N, Cc), dtype=jnp.float32)
    labels = jax.random.randint(k2, (N,), 0, Cc, dtype=jnp.int32)
    loss = jax.block_until_ready(cross_entropy_loss(logits, labels))
    ref = _reference_ce(logits, labels, 0.0)
    assert jnp.allclose(loss, ref, rtol=1e-5, atol=1e-5), (loss, ref)

    # --- bf16 logits path (halves HBM read; kernel upcasts internally) ------
    loss_bf16 = jax.block_until_ready(
        cross_entropy_loss(logits.astype(jnp.bfloat16), labels))
    ref_bf16 = _reference_ce(logits.astype(jnp.bfloat16).astype(jnp.float32),
                             labels, 0.0)
    assert jnp.allclose(loss_bf16, ref_bf16, rtol=1e-4, atol=1e-4), (
        loss_bf16, ref_bf16)

    # --- unaligned C / N exercises lane + row masking (smoothing variant) ---
    N2, C2 = 10, 40
    logits2 = jax.random.normal(k3, (N2, C2), dtype=jnp.float32)
    labels2 = jax.random.randint(k4, (N2,), 0, C2, dtype=jnp.int32)
    loss2 = jax.block_until_ready(
        cross_entropy_loss(logits2, labels2, smoothing=0.1))
    ref2 = _reference_ce(logits2, labels2, 0.1)
    assert jnp.allclose(loss2, ref2, rtol=1e-5, atol=1e-5), (loss2, ref2)

    # --- forced tiny tile + 2 partials: clamped index_map + duplicate mask --
    N3, C3 = 20, 40
    logits3 = jax.random.normal(k6, (N3, C3), dtype=jnp.float32)
    labels3 = jax.random.randint(k7, (N3,), 0, C3, dtype=jnp.int32)
    loss3 = jax.block_until_ready(
        cross_entropy_loss(logits3, labels3, row_tile=8, num_partials=2))
    ref3 = _reference_ce(logits3, labels3, 0.0)
    assert jnp.allclose(loss3, ref3, rtol=1e-5, atol=1e-5), (loss3, ref3)

    # --- make_feature_vector (global average pooling) -----------------------
    feats = jax.random.normal(k5, (2, 4, 16, 16), dtype=jnp.float32)
    fv = jax.block_until_ready(make_feature_vector(feats))
    fv_ref = jnp.mean(feats, axis=(2, 3))
    assert jnp.allclose(fv, fv_ref, rtol=1e-5, atol=1e-5)

    print("KERNEL_OK")
</pallas_src>

<mosaic_0001>
module attributes {stable_mosaic.version = 11 : i64} {
  func.func @_ce_kernel(%arg0: i32, %arg1: i32, %arg2: memref<16x128xf32, #tpu.memory_space<vmem>>, %arg3: memref<16x1xi32, #tpu.memory_space<vmem>>, %arg4: memref<1x1x1xf32, #tpu.memory_space<vmem>>, %arg5: memref<1x1xf32, #tpu.memory_space<vmem>>) attributes {dimension_semantics = [#tpu.dimension_semantics<parallel>, #tpu.dimension_semantics<arbitrary>], iteration_bounds = array<i64: 1, 1>, scalar_prefetch = 0 : i64, scratch_operands = 1 : i64, tpu.core_type = #tpu.core_type<tc>, window_params = [{transform_indices = @transform_0, window_bounds = array<i64: 16, 128>}, {transform_indices = @transform_1, window_bounds = array<i64: 16, 1>}, {transform_indices = @transform_2, window_bounds = array<i64: 1, 1, 1>}]} {
    %c0_i32 = arith.constant 0 : i32
    %0 = arith.cmpi eq, %arg1, %c0_i32 : i32
    %1 = arith.extui %0 : i1 to i32
    %c0_i32_0 = arith.constant 0 : i32
    %2 = arith.cmpi ne, %1, %c0_i32_0 : i32
    scf.if %2 {
      %cst_14 = arith.constant 0.000000e+00 : f32
      %32 = vector.broadcast %cst_14 : f32 to vector<1x1xf32>
      %c0_15 = arith.constant 0 : index
      %c0_16 = arith.constant 0 : index
      %33 = vector.load %arg5[%c0_15, %c0_16] : memref<1x1xf32, #tpu.memory_space<vmem>>, vector<1x1xf32>
      tpu.vector_store %arg5[%c0_15, %c0_16], %32 {strides = array<i32>} : memref<1x1xf32, #tpu.memory_space<vmem>>, vector<1x1xf32>,
    } else {
    }
    %c0 = arith.constant 0 : index
    %c0_1 = arith.constant 0 : index
    %3 = vector.load %arg2[%c0, %c0_1] : memref<16x128xf32, #tpu.memory_space<vmem>>, vector<16x128xf32>
    %c0_2 = arith.constant 0 : index
    %c0_3 = arith.constant 0 : index
    %4 = vector.load %arg3[%c0_2, %c0_3] : memref<16x1xi32, #tpu.memory_space<vmem>>, vector<16x1xi32>
    %5 = tpu.iota {dimensions = array<i32: 1>} : vector<16x128xi32>
    %cst = arith.constant dense<0xFF800000> : vector<16xf32>
    %6 = vector.multi_reduction <maximumf>, %3, %cst [1] : vector<16x128xf32> to vector<16xf32>
    %7 = vector.shape_cast %6 : vector<16xf32> to vector<16x1xf32>
    %8 = vector.broadcast %7 : vector<16x1xf32> to vector<16x128xf32>
    %9 = arith.subf %3, %8 : vector<16x128xf32>
    %10 = math.exp %9 : vector<16x128xf32>
    %cst_4 = arith.constant dense<0.000000e+00> : vector<16xf32>
    %11 = vector.multi_reduction <add>, %10, %cst_4 [1] : vector<16x128xf32> to vector<16xf32>
    %12 = vector.shape_cast %11 : vector<16xf32> to vector<16x1xf32>
    %13 = math.log %12 : vector<16x1xf32>
    %14 = vector.broadcast %4 : vector<16x1xi32> to vector<16x128xi32>
    %15 = arith.cmpi eq, %5, %14 : vector<16x128xi32>
    %cst_5 = arith.constant 0.000000e+00 : f32
    %16 = vector.broadcast %cst_5 : f32 to vector<16x128xf32>
    %17 = arith.select %15, %9, %16 : vector<16x128xi1>, vector<16x128xf32>
    %cst_6 = arith.constant dense<0.000000e+00> : vector<16xf32>
    %18 = vector.multi_reduction <add>, %17, %cst_6 [1] : vector<16x128xf32> to vector<16xf32>
    %19 = vector.shape_cast %18 : vector<16xf32> to vector<16x1xf32>
    %20 = arith.subf %13, %19 : vector<16x1xf32>
    %c0_7 = arith.constant 0 : index
    %c0_8 = arith.constant 0 : index
    %21 = vector.load %arg5[%c0_7, %c0_8] : memref<1x1xf32, #tpu.memory_space<vmem>>, vector<1x1xf32>
    %22 = vector.shape_cast %20 : vector<16x1xf32> to vector<1x16x1xf32>
    %cst_9 = arith.constant dense<0.000000e+00> : vector<1xf32>
    %23 = vector.multi_reduction <add>, %22, %cst_9 [1, 2] : vector<1x16x1xf32> to vector<1xf32>
    %24 = vector.shape_cast %23 : vector<1xf32> to vector<1x1x1xf32>
    %25 = vector.extract %24[0, 0, 0] : f32 from vector<1x1x1xf32>
    %26 = vector.broadcast %25 : f32 to vector<1x1xf32>
    %27 = arith.addf %21, %26 : vector<1x1xf32>
    %c0_10 = arith.constant 0 : index
    %c0_11 = arith.constant 0 : index
    %28 = vector.load %arg5[%c0_10, %c0_11] : memref<1x1xf32, #tpu.memory_space<vmem>>, vector<1x1xf32>
    tpu.vector_store %arg5[%c0_10, %c0_11], %27 {strides = array<i32>} : memref<1x1xf32, #tpu.memory_space<vmem>>, vector<1x1xf32>,
    %c0_i32_12 = arith.constant 0 : i32
    %29 = arith.cmpi eq, %arg1, %c0_i32_12 : i32
    %30 = arith.extui %29 : i1 to i32
    %c0_i32_13 = arith.constant 0 : i32
    %31 = arith.cmpi ne, %30, %c0_i32_13 : i32
    scf.if %31 {
      %c0_14 = arith.constant 0 : index
      %c0_15 = arith.constant 0 : index
      %32 = vector.load %arg5[%c0_14, %c0_15] : memref<1x1xf32, #tpu.memory_space<vmem>>, vector<1x1xf32>
      %c0_16 = arith.constant 0 : index
      %c0_17 = arith.constant 0 : index
      %c0_18 = arith.constant 0 : index
      %33 = vector.load %arg4[%c0_16, %c0_17, %c0_18] : memref<1x1x1xf32, #tpu.memory_space<vmem>>, vector<1x1x1xf32>
      %34 = vector.shape_cast %33 : vector<1x1x1xf32> to vector<1x1xf32>
      %35 = vector.shape_cast %32 : vector<1x1xf32> to vector<1x1x1xf32>
      tpu.vector_store %arg4[%c0_16, %c0_17, %c0_18], %35 {strides = array<i32>} : memref<1x1x1xf32, #tpu.memory_space<vmem>>, vector<1x1x1xf32>,
    } else {
    }
    return
  }
  func.func @transform_0(%arg0: i32, %arg1: i32) -> (i32, i32) {
    %c1_i32 = arith.constant 1 : i32
    %0 = arith.muli %arg0, %c1_i32 : i32
    %1 = arith.addi %0, %arg1 : i32
    %c0_i32 = arith.constant 0 : i32
    %2 = arith.minsi %1, %c0_i32 : i32
    %c0_i32_0 = arith.constant 0 : i32
    %c0_i32_1 = arith.constant 0 : i32
    return %2, %c0_i32_0 : i32, i32
  }
  func.func @transform_1(%arg0: i32, %arg1: i32) -> (i32, i32) {
    %c1_i32 = arith.constant 1 : i32
    %0 = arith.muli %arg0, %c1_i32 : i32
    %1 = arith.addi %0, %arg1 : i32
    %c0_i32 = arith.constant 0 : i32
    %2 = arith.minsi %1, %c0_i32 : i32
    %c0_i32_0 = arith.constant 0 : i32
    %c0_i32_1 = arith.constant 0 : i32
    return %2, %c0_i32_0 : i32, i32
  }
  func.func @transform_2(%arg0: i32, %arg1: i32) -> (i32, i32, i32) {
    %c0_i32 = arith.constant 0 : i32
    %c0_i32_0 = arith.constant 0 : i32
    %c0_i32_1 = arith.constant 0 : i32
    return %arg0, %c0_i32, %c0_i32_0 : i32, i32, i32
  }
}

</mosaic_0001>

<bundles_post_ra>
// kernel: tpu_custom_call.1
= control target key start
LH: loop header
LB: loop body
LE: loop exit
PB: predicated region body
PF: predicated region fallthrough
CT: control target
= control target key end

     0   :  { %7 = vsyncpa [#allocation4], 0  ;;  %s301_s0 = inlined_call_operand.hbm [shape: f32[16,128], index: 0, kind: input, shape index: {}]   ;;  %s302_s1 = inlined_call_operand.hbm [shape: s32[16,1], index: 1, kind: input, shape index: {}]   ;;  %s303_s2 = inlined_call_operand.hbm [shape: f32[1,1,1], index: 2, kind: output, shape index: {}]  }
   0x1   :  { %8 = vsyncpa [#allocation7], 0 }
   0x2   :  { %9 = vsyncpa [#allocation5], 0  ;;  %s240_s9 = smov [#allocation3]   ;;  %s168_s13 = scalar_lea.hbm %s301_s0, 256 }
   0x3   :  { %s21_s10 = sshll.u32 %s240_s9, 4  ;;  %p169_p0 = scmp.ne.s32.totalorder %s301_s0, %s168_s13  ;;  %s22_s10 = int_to_ptr.vmem [resolvable:$true] %s21_s10 }
   0x4   :  { %p172_p1 = scmp.lt.u32.totalorder %s168_s13, %s301_s0 }
   0x6   :  { %p174_p2 = pnand %p172_p1, %p169_p0 }
   0x8   :  { %177 = shalt.err (!%p174_p2)
}
   0x9   :  { %s178_s18 = scalar_lea.vmem %s22_s10, 256  ;;  %p183_p4 = scmp.lt.s32.totalorder %s22_s10, %s22_s10 }
   0xa   :  { %p179_p3 = scmp.ne.s32.totalorder %s22_s10, %s178_s18  ;;  %p184_p5 = scmp.lt.s32.totalorder %s178_s18, %s178_s18 }
   0xc   :  { %p185_p6 = por %p184_p5, %p183_p4 }
   0xe   :  { %p186_p7 = pnand %p185_p6, %p179_p3 }
  0x10   :  { %189 = shalt.err (!%p186_p7)
}
  0x11   :  { %s241_s19 = smov 128   ;;  %s242_s20 = smov 8  }
  0x12   :  { %27 = dma.hbm_to_vmem [thread:$0]  %s301_s0, 256, %s22_s10, [#allocation4], %s241_s19, %s241_s19, %s242_s20  }
  0x13   :  { %s243_s23 = smov [#allocation6]   ;;  %s190_s27 = scalar_lea.hbm %s302_s1, 256 }
  0x14   :  { %s39_s24 = sshll.u32 %s243_s23, 4  ;;  %p191_p8 = scmp.ne.s32.totalorder %s302_s1, %s190_s27  ;;  %s40_s24 = int_to_ptr.vmem [resolvable:$true] %s39_s24 }
  0x15   :  { %p194_p9 = scmp.lt.u32.totalorder %s190_s27, %s302_s1 }
  0x17   :  { %p196_p10 = pnand %p194_p9, %p191_p8 }
  0x19   :  { %199 = shalt.err (!%p196_p10)
}
  0x1a   :  { %s200_s4 = scalar_lea.vmem %s40_s24, 256  ;;  %p205_p12 = scmp.lt.s32.totalorder %s40_s24, %s40_s24 }
  0x1b   :  { %p201_p11 = scmp.ne.s32.totalorder %s40_s24, %s200_s4  ;;  %p206_p13 = scmp.lt.s32.totalorder %s200_s4, %s200_s4 }
  0x1d   :  { %p207_p0 = por %p206_p13, %p205_p12 }
  0x1f   :  { %p208_p1 = pnand %p207_p0, %p201_p11 }
  0x21   :  { %211 = shalt.err (!%p208_p1)
}
  0x22   :  { %45 = dma.hbm_to_vmem [thread:$0]  %s302_s1, 256, %s40_s24, [#allocation7], %s241_s19, %s241_s19, %s242_s20  }
  0x23   :  { %234 = dma.done.wait [#allocation4], 256  }
  0x24   :  { %235 = vsyncadd [#allocation4], 4294967040 }
  0x25   :  { %236 = dma.done.wait [#allocation7], 256  }
  0x26   :  { %237 = vsyncadd [#allocation7], 4294967040  ;;  %v244_v0 = vmov 0   ;;  %v66_v1 = vld [vmem:[#allocation3] sm:$0xff]  ;;  %v68_v2 = vld [vmem:[#allocation6] sm:$0xff]  ;;  %v70_v11 = vlaneseq  ;;  %vm107_vm2 = vcmask 7168  }
  0x27   :  { %158 = vset.pattern.permute.xlu1 %v244_v0  ;;  %159 = vset.pattern.permute.xlu0 %v244_v0  ;;  %v67_v3 = vld [vmem:[#allocation3 + $0x8] sm:$0xff]  ;;  %v69_v4 = vld [vmem:[#allocation6 + $0x8] sm:$0xff]  ;;  %vm64_vm3 = vcmask 0   ;;  %v245_v32 = vmov 0.0   ;;  %s246_s6 = smov [#allocation8]  }
  0x28   :  { %72 = vmax.xlane.f32.xlu0 %v66_v1  ;;  %91 = vperm.xlu1 %158, %v68_v2   ;;  %v71_v13 = vand.u32 127, %v70_v11  ;;  %65 = vst.msk [vmem:[#allocation2] sm:$0x1] %vm64_vm3, %v245_v32  ;;  %s135_s7 = sshll.u32 %s246_s6, 4  ;;  %s136_s7 = int_to_ptr.vmem [resolvable:$true] %s135_s7 }
  0x29   :  { %s212_s8 = scalar_lea.vmem %s136_s7, 16  ;;  %s216_s9 = scalar_lea.vmem %s136_s7, 32 }
  0x2a   :  { %p213_p2 = scmp.ne.s32.totalorder %s136_s7, %s212_s8  ;;  %p217_p3 = scmp.lt.s32.totalorder %s136_s7, %s136_s7 }
  0x2b   :  { %p218_p4 = scmp.lt.s32.totalorder %s216_s9, %s212_s8 }
  0x2c   :  { %74 = vmax.xlane.f32.xlu0 %v67_v3  ;;  %94 = vperm.xlu1 %158, %v69_v4  }
  0x2d   :  { %p219_p5 = por %p218_p4, %p217_p3 }
  0x2f   :  { %v106_v40 = vld [vmem:[#allocation2] sm:$0x1]  ;;  %p220_p6 = pnand %p219_p5, %p213_p2 }
  0xa7   :  { %v92_v12 = vpop.permute.xlu1 %91 }
  0xa8   :  { %vm96_vm0 = vcmp.eq.s32.totalorder %v71_v13, %v92_v12 }
  0xab   :  { %v95_v15 = vpop.permute.xlu1 %94 }
  0xac   :  { %vm97_vm1 = vcmp.eq.s32.totalorder %v71_v13, %v95_v15 }
  0xb5   :  { %v73_v5 = vpop.xlane.xlu0 %72 }
  0xb6   :  { %v76_v6 = vsub.f32 %v66_v1, %v73_v5 }
  0xb8   :  { %v78_v7 = vmul.f32 1.442695, %v76_v6  ;;  %v98_v17 = vsel %vm96_vm0, %v76_v6, 0.0 }
  0xb9   :  { %v75_v8 = vpop.xlane.xlu0 %74 }
  0xba   :  { %160 = vpow2.f32 %v78_v7  ;;  %v77_v9 = vsub.f32 %v67_v3, %v75_v8 }
  0xbc   :  { %v80_v10 = vmul.f32 1.442695, %v77_v9  ;;  %v99_v18 = vsel %vm97_vm1, %v77_v9, 0.0 }
  0xbe   :  { %162 = vpow2.f32 %v80_v10 }
  0xc4   :  { %v161_v14 = vpop.eup %160 }
  0xc5   :  { %82 = vadd.xlane.f32.xlu0 %v161_v14 }
  0xc8   :  { %v163_v16 = vpop.eup %162 }
  0xc9   :  { %100 = vadd.xlane.f32.xlu0 %v98_v17  ;;  %84 = vadd.xlane.f32.xlu1 %v163_v16 }
  0xcd   :  { %102 = vadd.xlane.f32.xlu0 %v99_v18 }
 0x152   :  { %v83_v19 = vpop.xlane.xlu0 %82 }
 0x153   :  { %164 = vlog2.f32 %v83_v19 }
 0x156   :  { %v85_v20 = vpop.xlane.xlu1 %84  ;;  %v101_v22 = vpop.xlane.xlu0 %100 }
 0x157   :  { %166 = vlog2.f32 %v85_v20 }
 0x15a   :  { %v103_v27 = vpop.xlane.xlu0 %102 }
 0x15d   :  { %v165_v21 = vpop.eup %164 }
 0x15e   :  { %v87_v23 = vmul.f32 0.6931472, %v165_v21 }
 0x160   :  { %v104_v25 = vsub.f32 %v87_v23, %v101_v22 }
 0x161   :  { %v167_v24 = vpop.eup %166 }
 0x162   :  { %v89_v26 = vmul.f32 0.6931472, %v167_v24  ;;  %v108_v29 = vsel %vm107_vm2, %v104_v25, 0.0 }
 0x164   :  { %v105_v28 = vsub.f32 %v89_v26, %v103_v27 }
 0x166   :  { %v109_v30 = vsel %vm107_vm2, %v105_v28, 0.0 }
 0x167   :  { %v110_v31 = vadd.f32 %v109_v30, %v108_v29 }
 0x169   :  { %111 = vadd.xlane.f32.xlu0 %v110_v31 }
 0x1f6   :  { %v112_v33 = vpop.xlane.xlu0 %111 }
 0x1f7   :  { %v113_v34 = vrot.slane %v112_v33, 4 }
 0x1f9   :  { %v114_v35 = vadd.f32 %v113_v34, %v112_v33 }
 0x1fb   :  { %v115_v36 = vrot.slane %v114_v35, 2 }
 0x1fd   :  { %v116_v37 = vadd.f32 %v115_v36, %v114_v35 }
 0x1ff   :  { %v117_v38 = vrot.slane %v116_v37, 1 }
 0x201   :  { %v118_v39 = vadd.f32 %v117_v38, %v116_v37 }
 0x203   :  { %149 = vpush %v118_v39 }
 0x234   :  { %s150_s1 = spop %149 }
 0x235   :  { %v120_v41 = vstv %s150_s1 }
 0x236   :  { %v121_v42 = vadd.f32 %v120_v41, %v106_v40 }
 0x238   :  { %123 = vst.msk [vmem:[#allocation2] sm:$0x1] %vm64_vm3, %v121_v42 }
 0x23f   :  { %v127_v43 = vld [vmem:[#allocation2] sm:$0x1] }
 0x240   :  { %128 = vst.msk [vmem:[#allocation8] sm:$0x1] %vm64_vm3, %v127_v43 }
 0x241   :  { %223 = shalt.err (!%p220_p6)
}
 0x242   :  { %s224_s12 = scalar_lea.hbm %s303_s2, 16 }
 0x243   :  { %p225_p7 = scmp.ne.s32.totalorder %s303_s2, %s224_s12  ;;  %p228_p8 = scmp.lt.u32.totalorder %s224_s12, %s303_s2 }
 0x245   :  { %p230_p9 = pnand %p228_p8, %p225_p7 }
 0x247   :  { %233 = shalt.err (!%p230_p9)
}
 0x248   :  { %138 = dma.vmem_to_hbm [thread:$0]  %s136_s7, 16, %s303_s2, [#allocation5]  }
 0x249   :  { %238 = dma.done.wait [#allocation5], 16  }
 0x24a   :  { %239 = vsyncadd [#allocation5], 4294967280 }
 0x24b   :  { %142 = vsyncpa [#allocation4], 1 }
 0x24c   :  { %143 = vsyncpa [#allocation7], 1 }
 0x24d   :  { %144 = vsyncpa [#allocation5], 1 }

</bundles_post_ra>
